<compile_context>
chip_gen: v5e
topology: v5e:2x2
jax: 0.10.0
libtpu: 0.0.40
codegen_flags: <defaults>
</compile_context>

<pallas_src>
import jax
import jax.numpy as jnp
from jax import lax
from jax.experimental import pallas as pl
from jax.experimental.pallas import tpu as pltpu

IN_FEATURES = 128
OUT_FEATURES = 128
TM_MAX = 4096        # max batch-tile rows (8 MiB double-buffered input VMEM)
SMALL_B_MAX = 1024   # single-block fast-path threshold


def _round_up(x, m):
    return ((x + m - 1) // m) * m


def _x_wT(x, w):
    # x @ W^T with W in PyTorch (out, in) layout; contract dim 1 of both on the
    # MXU (no separate transpose op anywhere; if a per-tile vxpose ever shows
    # up in the bundle dump, pre-transpose the 64 KiB weight once instead).
    return lax.dot_general(
        x, w,
        dimension_numbers=(((1,), (1,)), ((), ())),
        preferred_element_type=jnp.float32)


# ----------------------------- small-batch path -----------------------------

def _small_kernel(x_ref, w_ref, gt_ref, loss_ref):
    y = _x_wT(x_ref[...], w_ref[...])
    diff = y - gt_ref[...].astype(jnp.float32)
    n_elems = y.shape[0] * y.shape[1]
    loss_ref[0, 0] = jnp.sum(diff * diff) / jnp.float32(n_elems)


def _forward_small(x, weight, gt):
    b = x.shape[0]
    loss2d = pl.pallas_call(
        _small_kernel,
        out_shape=jax.ShapeDtypeStruct((1, 1), jnp.float32),
        grid_spec=pltpu.PrefetchScalarGridSpec(
            num_scalar_prefetch=0,
            grid=(1,),
            in_specs=[
                pl.BlockSpec((b, IN_FEATURES), lambda i: (0, 0)),
                pl.BlockSpec((OUT_FEATURES, IN_FEATURES), lambda i: (0, 0)),
                pl.BlockSpec((b, OUT_FEATURES), lambda i: (0, 0)),
            ],
            out_specs=pl.BlockSpec(memory_space=pltpu.MemorySpace.SMEM),
        ),
        compiler_params=pltpu.CompilerParams(
            dimension_semantics=("arbitrary",)),
    )(x, weight, gt)
    return loss2d[0, 0]


# ------------------------------ tiled path ----------------------------------

def _make_tiled_kernel(tm, num_tiles, valid_last):
    ragged = (valid_last != tm)  # static under jit

    def kernel(x_ref, w_ref, gt_ref, partial_ref):
        y = _x_wT(x_ref[...], w_ref[...])                    # (tm, 128) f32
        diff = y - gt_ref[...].astype(jnp.float32)
        sq = diff * diff
        if ragged:
            # In-kernel ragged-tail mask (replaces wrapper-side jnp.pad).
            # Rows >= valid on the last tile come from a partial-block DMA and
            # may hold garbage; a select (not a multiply) forces them to exact
            # zero so NaN/Inf garbage cannot leak into the sum.  VALU-only,
            # hidden under DMA slack.
            i = pl.program_id(0)
            valid = jnp.where(i == num_tiles - 1, valid_last, tm)
            row = lax.broadcasted_iota(jnp.int32, sq.shape, 0)
            sq = jnp.where(row < valid, sq, jnp.float32(0.0))
        # VALU-only per-tile reduction to one (8,128) vreg (vreg-wise adds, no
        # relayout); XLU cross-lane collapse + divide deferred to outside.
        partial_ref[...] = sq.reshape(tm // 8, 8, OUT_FEATURES).sum(axis=0)[None]

    return kernel


def _forward_tiled(x, weight, gt):
    b = x.shape[0]
    # Tile selection: big enough to amortize per-step overhead, but >= 2 tiles
    # (even count when possible) so both v7x TensorCores get work.
    num_tiles = max(2, 2 * pl.cdiv(pl.cdiv(b, TM_MAX), 2))
    tm = _round_up(pl.cdiv(b, num_tiles), 256)
    num_tiles = pl.cdiv(b, tm)
    valid_last = b - (num_tiles - 1) * tm

    kernel = _make_tiled_kernel(tm, num_tiles, valid_last)
    partials = pl.pallas_call(
        kernel,
        out_shape=jax.ShapeDtypeStruct((num_tiles, 8, OUT_FEATURES), jnp.float32),
        grid_spec=pltpu.PrefetchScalarGridSpec(
            num_scalar_prefetch=0,
            grid=(num_tiles,),
            in_specs=[
                pl.BlockSpec((tm, IN_FEATURES), lambda i: (i, 0)),
                pl.BlockSpec((OUT_FEATURES, IN_FEATURES), lambda i: (0, 0)),
                pl.BlockSpec((tm, OUT_FEATURES), lambda i: (i, 0)),
            ],
            out_specs=pl.BlockSpec((1, 8, OUT_FEATURES), lambda i: (i, 0, 0)),
        ),
        compiler_params=pltpu.CompilerParams(
            dimension_semantics=("parallel",)),
    )(x, weight, gt)
    # Tiny final reduce + mean in plain JAX (outside the hot loop); divide by
    # the true element count (masked tail rows contributed exactly 0).
    return jnp.sum(partials) / jnp.float32(b * OUT_FEATURES)


@jax.jit
def model_foo_forward(x, weight, gt):
    """x: (B, 128), weight: (128, 128) PyTorch (out, in) layout, gt: (B, 128).

    Returns scalar MSE loss, matching ModelFoo.forward.
    """
    if x.shape[0] <= SMALL_B_MAX:
        return _forward_small(x, weight, gt)
    return _forward_tiled(x, weight, gt)


if __name__ == "__main__":
    key = jax.random.PRNGKey(0)
    k_x, k_w, k_gt, k_x2, k_gt2 = jax.random.split(key, 5)

    # Deterministic synthetic "parameter" init.
    # PyTorch Linear weight shape is (out_features, in_features).
    bound = 1.0 / (IN_FEATURES ** 0.5)
    weight = jax.random.uniform(
        k_w, (OUT_FEATURES, IN_FEATURES), dtype=jnp.float32,
        minval=-bound, maxval=bound)

    def ref_loss(x, gt):
        y = jnp.dot(x, weight.T, precision=lax.Precision.HIGHEST)
        return jnp.mean((y - gt) ** 2)

    # --- Small-batch path (b not a multiple of 8 -> exercises sublane padding)
    B_small = 10
    x = jax.random.normal(k_x, (B_small, IN_FEATURES), dtype=jnp.float32)
    gt = jax.random.normal(k_gt, (B_small, OUT_FEATURES), dtype=jnp.float32)

    loss = model_foo_forward(x, weight, gt)
    jax.block_until_ready(loss)
    ref = ref_loss(x, gt)
    assert jnp.allclose(loss, ref, rtol=1e-4, atol=1e-5), (loss, ref)

    # --- Tiled path (2 tiles, ragged last tile -> exercises in-kernel mask) --
    B_big = 2500
    x2 = jax.random.normal(k_x2, (B_big, IN_FEATURES), dtype=jnp.float32)
    gt2 = jax.random.normal(k_gt2, (B_big, OUT_FEATURES), dtype=jnp.float32)

    loss2 = model_foo_forward(x2, weight, gt2)
    jax.block_until_ready(loss2)
    ref2 = ref_loss(x2, gt2)
    assert jnp.allclose(loss2, ref2, rtol=1e-4, atol=1e-5), (loss2, ref2)

    print("KERNEL_OK")
</pallas_src>

<mosaic_0001>
module attributes {stable_mosaic.version = 11 : i64} {
  func.func @_small_kernel(%arg0: i32, %arg1: memref<10x128xf32, #tpu.memory_space<vmem>>, %arg2: memref<128x128xf32, #tpu.memory_space<vmem>>, %arg3: memref<10x128xf32, #tpu.memory_space<vmem>>, %arg4: memref<1x1xf32, #tpu.memory_space<smem>>) attributes {dimension_semantics = [#tpu.dimension_semantics<arbitrary>], iteration_bounds = array<i64: 1>, scalar_prefetch = 0 : i64, scratch_operands = 0 : i64, tpu.core_type = #tpu.core_type<tc>, window_params = [{pipeline_mode = #tpu.pipeline_mode<synchronous>, transform_indices = @transform_0, window_bounds = array<i64: 10, 128>}, {pipeline_mode = #tpu.pipeline_mode<synchronous>, transform_indices = @transform_1, window_bounds = array<i64: 128, 128>}, {pipeline_mode = #tpu.pipeline_mode<synchronous>, transform_indices = @transform_2, window_bounds = array<i64: 10, 128>}, {transform_indices = @transform_3, window_bounds = array<i64: 1, 1>}]} {
    %c0 = arith.constant 0 : index
    %c0_0 = arith.constant 0 : index
    %0 = vector.load %arg1[%c0, %c0_0] : memref<10x128xf32, #tpu.memory_space<vmem>>, vector<10x128xf32>
    %c0_1 = arith.constant 0 : index
    %c0_2 = arith.constant 0 : index
    %1 = vector.load %arg2[%c0_1, %c0_2] : memref<128x128xf32, #tpu.memory_space<vmem>>, vector<128x128xf32>
    %cst = arith.constant dense<0.000000e+00> : vector<10x128xf32>
    %2 = tpu.matmul %0, %1, %cst {dimension_numbers = #tpu.dot_dimension_numbers<[1], [1], [0], [0], [0, 0, 1, 0], [], []>} : vector<10x128xf32>, vector<128x128xf32>, vector<10x128xf32> -> vector<10x128xf32>
    %c0_3 = arith.constant 0 : index
    %c0_4 = arith.constant 0 : index
    %3 = vector.load %arg3[%c0_3, %c0_4] : memref<10x128xf32, #tpu.memory_space<vmem>>, vector<10x128xf32>
    %4 = arith.subf %2, %3 : vector<10x128xf32>
    %5 = arith.mulf %4, %4 : vector<10x128xf32>
    %6 = vector.shape_cast %5 : vector<10x128xf32> to vector<1x10x128xf32>
    %cst_5 = arith.constant dense<0.000000e+00> : vector<1xf32>
    %7 = vector.multi_reduction <add>, %6, %cst_5 [1, 2] : vector<1x10x128xf32> to vector<1xf32>
    %8 = vector.shape_cast %7 : vector<1xf32> to vector<1x1x1xf32>
    %9 = vector.extract %8[0, 0, 0] : f32 from vector<1x1x1xf32>
    %cst_6 = arith.constant 1.280000e+03 : f32
    %10 = arith.divf %9, %cst_6 : f32
    %c0_7 = arith.constant 0 : index
    %c0_8 = arith.constant 0 : index
    %11 = memref.load %arg4[%c0_7, %c0_8] : memref<1x1xf32, #tpu.memory_space<smem>>
    memref.store %10, %arg4[%c0_7, %c0_8] : memref<1x1xf32, #tpu.memory_space<smem>>
    return
  }
  func.func @transform_0(%arg0: i32) -> (i32, i32) {
    %c0_i32 = arith.constant 0 : i32
    %c0_i32_0 = arith.constant 0 : i32
    %c0_i32_1 = arith.constant 0 : i32
    return %c0_i32, %c0_i32_0 : i32, i32
  }
  func.func @transform_1(%arg0: i32) -> (i32, i32) {
    %c0_i32 = arith.constant 0 : i32
    %c0_i32_0 = arith.constant 0 : i32
    %c0_i32_1 = arith.constant 0 : i32
    return %c0_i32, %c0_i32_0 : i32, i32
  }
  func.func @transform_2(%arg0: i32) -> (i32, i32) {
    %c0_i32 = arith.constant 0 : i32
    %c0_i32_0 = arith.constant 0 : i32
    %c0_i32_1 = arith.constant 0 : i32
    return %c0_i32, %c0_i32_0 : i32, i32
  }
  func.func @transform_3(%arg0: i32) -> (i32, i32) {
    %c0_i32 = arith.constant 0 : i32
    %c0_i32_0 = arith.constant 0 : i32
    %c0_i32_1 = arith.constant 0 : i32
    return %c0_i32, %c0_i32_0 : i32, i32
  }
}

</mosaic_0001>

<bundles_post_ra>
// kernel: model_foo_forward.1
= control target key start
LH: loop header
LB: loop body
LE: loop exit
PB: predicated region body
PF: predicated region fallthrough
CT: control target
= control target key end

     0   :  { %8 = vsyncpa [#allocation3], 0  ;;  %s307_s0 = inlined_call_operand.hbm [shape: f32[10,128], index: 0, kind: input, shape index: {}]   ;;  %s308_s1 = inlined_call_operand.hbm [shape: f32[128,128], index: 1, kind: input, shape index: {}]   ;;  %s309_s2 = inlined_call_operand.hbm [shape: f32[10,128], index: 2, kind: input, shape index: {}]   ;;  %s310_s3 = inlined_call_operand.hbm [shape: f32[1,1], index: 3, kind: output, shape index: {}]  }
   0x1   :  { %9 = vsyncpa [#allocation6], 0 }
   0x2   :  { %10 = vsyncpa [#allocation4], 0  ;;  %s28_s14 = sshll.u32 %s308_s1, 4  ;;  %s268_s15 = smov [#allocation5]   ;;  %s29_s14 = int_to_ptr.hbm [resolvable:$true] %s28_s14 }
   0x3   :  { %s30_s16 = sshll.u32 %s268_s15, 4  ;;  %s15_s19 = sshll.u32 %s307_s0, 4  ;;  %s31_s16 = int_to_ptr.vmem [resolvable:$true] %s30_s16  ;;  %s16_s19 = int_to_ptr.hbm [resolvable:$true] %s15_s19 }
   0x4   :  { %s269_s20 = smov 128   ;;  %s270_s21 = smov 8  }
   0x5   :  { %36 = dma.hbm_to_vmem [thread:$0]  %s29_s14, 2048, %s31_s16, [#allocation6], %s269_s20, %s269_s20, %s270_s21  }
   0x6   :  { %s271_s22 = smov [#allocation2]   ;;  %s41_s26 = sshll.u32 %s309_s2, 4  ;;  %s42_s26 = int_to_ptr.hbm [resolvable:$true] %s41_s26 }
   0x7   :  { %s17_s23 = sshll.u32 %s271_s22, 4  ;;  %s272_s1 = smov [#allocation7]   ;;  %s18_s23 = int_to_ptr.vmem [resolvable:$true] %s17_s23 }
   0x8   :  { %23 = dma.hbm_to_vmem [thread:$0]  %s16_s19, 256, %s18_s23, [#allocation3], %s269_s20, %s269_s20, %s270_s21  }
   0x9   :  { %s43_s27 = sshll.u32 %s272_s1, 4  ;;  %s44_s27 = int_to_ptr.vmem [resolvable:$true] %s43_s27 }
   0xa   :  { %49 = dma.hbm_to_vmem [thread:$0]  %s42_s26, 256, %s44_s27, [#allocation6], %s269_s20, %s269_s20, %s270_s21  }
   0xb   :  { %262 = dma.done.wait [#allocation3], 256  }
   0xc   :  { %263 = vsyncadd [#allocation3], 4294967040 }
   0xd   :  { %264 = dma.done.wait [#allocation6], 2304  }
   0xe   :  { %265 = vsyncadd [#allocation6], 4294964992  ;;  %v79_v0 = vld [vmem:[#allocation5 + $0x78] sm:$0xff]  ;;  %v78_v1 = vld [vmem:[#allocation5 + $0x70] sm:$0xff]  ;;  %vm109_vm0 = vcmask 1041408   ;;  %v273_v28 = vmov 1280.0  }
   0xf   :  { %149 = vmatpush.xpose.msra.mxu1 %v79_v0  ;;  %80 = vmatpush.xpose.msra.mxu0 %v79_v0  ;;  %v77_v2 = vld [vmem:[#allocation5 + $0x68] sm:$0xff]  ;;  %v76_v3 = vld [vmem:[#allocation5 + $0x60] sm:$0xff]  ;;  %v75_v4 = vld [vmem:[#allocation5 + $0x58] sm:$0xff]  ;;  %176 = vrcp.f32 %v273_v28  ;;  %s137_s28 = sshll.u32 %s310_s3, 4  ;;  %s274_s5 = smov [#allocation8]   ;;  %s138_s28 = int_to_ptr.hbm [resolvable:$true] %s137_s28 }
  0x10   :  { %v74_v5 = vld [vmem:[#allocation5 + $0x50] sm:$0xff]  ;;  %v73_v6 = vld [vmem:[#allocation5 + $0x48] sm:$0xff]  ;;  %v72_v7 = vld [vmem:[#allocation5 + $0x40] sm:$0xff] }
  0x11   :  { %v71_v8 = vld [vmem:[#allocation5 + $0x38] sm:$0xff]  ;;  %v70_v9 = vld [vmem:[#allocation5 + $0x30] sm:$0xff]  ;;  %v69_v10 = vld [vmem:[#allocation5 + $0x28] sm:$0xff] }
  0x12   :  { %v68_v11 = vld [vmem:[#allocation5 + $0x20] sm:$0xff]  ;;  %v67_v12 = vld [vmem:[#allocation5 + $0x18] sm:$0xff]  ;;  %v66_v13 = vld [vmem:[#allocation5 + $0x10] sm:$0xff] }
  0x13   :  { %150 = vmatpush.xpose.msra.mxu1 %v78_v1  ;;  %81 = vmatpush.xpose.msra.mxu0 %v78_v1  ;;  %v65_v14 = vld [vmem:[#allocation5 + $0x8] sm:$0xff]  ;;  %v64_v15 = vld [vmem:[#allocation5] sm:$0xff]  ;;  %v63_v16 = vld [vmem:[#allocation2 + $0x8] sm:$0x3] }
  0x14   :  { %v62_v17 = vld [vmem:[#allocation2] sm:$0xff]  ;;  %v104_v18 = vld [vmem:[#allocation7 + $0x8] sm:$0x3]  ;;  %v103_v19 = vld [vmem:[#allocation7] sm:$0xff] }
  0x15   :  { %v177_v29 = vpop.eup %176 }
  0x16   :  { %v122_v30 = vmul.f32 1280.0, %v177_v29  ;;  %vm126_vm1 = vweird.f32 %v177_v29 }
  0x17   :  { %151 = vmatpush.xpose.msra.mxu1 %v77_v2  ;;  %82 = vmatpush.xpose.msra.mxu0 %v77_v2 }
  0x18   :  { %v123_v31 = vsub.f32 1.0, %v122_v30 }
  0x1a   :  { %v124_v35 = vmul.f32 %v177_v29, %v123_v31 }
  0x1b   :  { %152 = vmatpush.xpose.msra.mxu1 %v76_v3  ;;  %83 = vmatpush.xpose.msra.mxu0 %v76_v3 }
  0x1c   :  { %v125_v38 = vadd.f32 %v177_v29, %v124_v35 }
  0x1e   :  { %v127_v41 = vsel %vm126_vm1, %v177_v29, %v125_v38 }
  0x1f   :  { %153 = vmatpush.xpose.msra.mxu1 %v75_v4  ;;  %84 = vmatpush.xpose.msra.mxu0 %v75_v4 }
  0x23   :  { %154 = vmatpush.xpose.msra.mxu1 %v74_v5  ;;  %85 = vmatpush.xpose.msra.mxu0 %v74_v5 }
  0x27   :  { %155 = vmatpush.xpose.msra.mxu1 %v73_v6  ;;  %86 = vmatpush.xpose.msra.mxu0 %v73_v6 }
  0x2b   :  { %156 = vmatpush.xpose.msra.mxu1 %v72_v7  ;;  %87 = vmatpush.xpose.msra.mxu0 %v72_v7 }
  0x2f   :  { %157 = vmatpush.xpose.msra.mxu1 %v71_v8  ;;  %88 = vmatpush.xpose.msra.mxu0 %v71_v8 }
  0x33   :  { %158 = vmatpush.xpose.msra.mxu1 %v70_v9  ;;  %89 = vmatpush.xpose.msra.mxu0 %v70_v9 }
  0x37   :  { %159 = vmatpush.xpose.msra.mxu1 %v69_v10  ;;  %90 = vmatpush.xpose.msra.mxu0 %v69_v10 }
  0x3b   :  { %160 = vmatpush.xpose.msra.mxu1 %v68_v11  ;;  %91 = vmatpush.xpose.msra.mxu0 %v68_v11 }
  0x3f   :  { %161 = vmatpush.xpose.msra.mxu1 %v67_v12  ;;  %92 = vmatpush.xpose.msra.mxu0 %v67_v12 }
  0x43   :  { %162 = vmatpush.xpose.msra.mxu1 %v66_v13  ;;  %93 = vmatpush.xpose.msra.mxu0 %v66_v13 }
  0x47   :  { %163 = vmatpush.xpose.msra.mxu1 %v65_v14  ;;  %94 = vmatpush.xpose.msra.mxu0 %v65_v14 }
  0x4b   :  { %164 = vmatpush.xpose.msra.mxu1 %v64_v15  ;;  %95 = vmatpush.xpose.msra.mxu0 %v64_v15 }
  0x4e   :  { %99 = vmatmul.f32.vlgmr.msra.gmra.mxu1 %v63_v16  ;;  %96 = vmatmul.f32.vlgmr.msra.gmra.mxu0 %v62_v17 }
  0xcb   :  { %v100_v20 = vpop.f32.mrf.mxu1  ;;  %v97_v21 = vpop.f32.mrf.mxu0 }
  0xcc   :  { %v106_v22 = vsub.f32 %v100_v20, %v104_v18  ;;  %v105_v23 = vsub.f32 %v97_v21, %v103_v19 }
  0xce   :  { %v108_v24 = vmul.f32 %v106_v22, %v106_v22  ;;  %v107_v25 = vmul.f32 %v105_v23, %v105_v23 }
  0xd0   :  { %v110_v26 = vsel %vm109_vm0, %v108_v24, 0.0 }
  0xd1   :  { %v111_v27 = vadd.f32 %v110_v26, %v107_v25 }
  0xd3   :  { %112 = vadd.xlane.f32.xlu0 %v111_v27 }
 0x146   :  { %v113_v32 = vpop.xlane.xlu0 %112 }
 0x147   :  { %v114_v33 = vrot.slane %v113_v32, 4 }
 0x149   :  { %v115_v34 = vadd.f32 %v114_v33, %v113_v32 }
 0x14b   :  { %v116_v36 = vrot.slane %v115_v34, 2 }
 0x14d   :  { %v117_v37 = vadd.f32 %v116_v36, %v115_v34 }
 0x14f   :  { %v118_v39 = vrot.slane %v117_v37, 1 }
 0x151   :  { %v119_v40 = vadd.f32 %v118_v39, %v117_v37 }
 0x153   :  { %165 = vpush %v119_v40 }
 0x154   :  { %167 = vpush %v127_v41 }
 0x184   :  { %s166_s29 = spop %165 }
 0x185   :  { %s168_s30 = spop %167 }
 0x186   :  { %s129_s4 = smul.f32 %s168_s30, %s166_s29 }
 0x188   :  { %131 = sst [smem:[#allocation8]] %s129_s4 }
 0x189   :  { %140 = dma.smem_to_hbm %s274_s5, 16, %s138_s28, [#allocation4]  }
 0x18a   :  { %266 = dma.done.wait [#allocation4], 16  }
 0x18b   :  { %267 = vsyncadd [#allocation4], 4294967280 }
 0x18c   :  { %145 = sfence }
 0x18d   :  { %146 = vsyncpa [#allocation3], 1 }
 0x18e   :  { %147 = vsyncpa [#allocation6], 1 }
 0x18f   :  { %148 = vsyncpa [#allocation4], 1 }

</bundles_post_ra>
